<compile_context>
chip_gen: v7x
topology: tpu7x:2x2x1
jax: 0.10.0
libtpu: 0.0.40
codegen_flags: <defaults>
</compile_context>

<pallas_src>
import functools

import jax
import jax.numpy as jnp
from jax import lax
from jax.experimental import pallas as pl
from jax.experimental.pallas import tpu as pltpu


def _grad_err_partial_kernel(pred_ref, gt_ref, out_ref, *, valid_mask):
    """(TB, H, W) chunk of depth maps -> (1, 1, 128) partial-sum tile.

    out[0, 0, 0] = sum |d/dx (gt - pred)| over the chunk,
    out[0, 0, 1] = sum |d/dy (gt - pred)| over the chunk.
    """
    err = gt_ref[...].astype(jnp.float32) - pred_ref[...].astype(jnp.float32)

    # --- x-gradient: reduce fully before forming the y-gradient so at most
    # one full-tile f32 diff is live at a time (keeps VMEM/vreg pressure low).
    dxa = jnp.abs(err[:, :, 1:] - err[:, :, :-1])        # (TB, H, W-1)
    if valid_mask:
        # Single fused finiteness test: |nan| < inf and |inf| < inf are both
        # False -> zeroed; finite values kept.
        dxa = jnp.where(dxa < jnp.inf, dxa, 0.0)
    s_dx = jnp.sum(dxa)

    # --- y-gradient (per-map slice along H; never crosses map boundaries).
    dya = jnp.abs(err[:, 1:, :] - err[:, :-1, :])         # (TB, H-1, W)
    if valid_mask:
        dya = jnp.where(dya < jnp.inf, dya, 0.0)
    s_dy = jnp.sum(dya)

    # Lane-dense (1, 128) output row: lane 0 = sum|dx|, lane 1 = sum|dy|.
    lane = lax.broadcasted_iota(jnp.int32, (1, 128), 1)
    out_ref[0] = jnp.where(lane == 0, s_dx, jnp.where(lane == 1, s_dy, 0.0))


def grad_depth_error_loss(pred_depth, gt_depth, *, valid_mask=True,
                          loss_weight=1.0, target_block_bytes=None):
    """JAX/Pallas equivalent of GradDepthErrorLoss.forward (NCHW inputs)."""
    N, C, H, W = pred_depth.shape
    B = N * C
    pred = pred_depth.reshape(B, H, W)
    gt = gt_depth.reshape(B, H, W)
    itemsize = pred.dtype.itemsize

    # ---- hardware-derived VMEM budget (v7x: 64 MiB, v5e/v6e: 128 MiB) ------
    try:
        info = pltpu.get_tpu_info()
        vmem_cap = int(getattr(info, "vmem_capacity_bytes", 0)) or (64 << 20)
    except Exception:  # conservative (v7x-sized) fallback
        vmem_cap = 64 << 20

    # Per map (H, W): 2 inputs x 2 pipeline buffers in the wire dtype plus
    # ~3 live f32 full-tile intermediates (err + one |diff| + slice temp).
    per_map_bytes = H * W * (4 * itemsize + 3 * 4)
    budget = max(per_map_bytes, int(0.75 * vmem_cap) - (4 << 20))
    tb_max = max(1, budget // per_map_bytes)
    if target_block_bytes is not None:
        tb_max = min(tb_max, max(1, target_block_bytes // (H * W * itemsize)))
    if B >= 2:
        tb_max = min(tb_max, B // 2)   # >= 2 blocks so both v7x TCs get work
    tb_max = max(1, min(tb_max, B))

    # Largest divisor of B that fits: no ragged block, no padding pass.
    tb = 1
    for d in range(tb_max, 0, -1):
        if B % d == 0:
            tb = d
            break
    num_blocks = B // tb

    # ---- VMEM limit: need vs 0.9x physical capacity (never exceeds v7x) ----
    in_tile = tb * H * W * itemsize
    f32_tile = tb * H * W * 4
    vmem_need = 4 * in_tile + 3 * f32_tile + (2 << 20)
    vmem_limit = int(min(max(vmem_need, 16 << 20), int(0.9 * vmem_cap)))

    kernel = functools.partial(_grad_err_partial_kernel,
                               valid_mask=bool(valid_mask))

    partials = pl.pallas_call(
        kernel,
        out_shape=jax.ShapeDtypeStruct((num_blocks, 1, 128), jnp.float32),
        grid_spec=pltpu.PrefetchScalarGridSpec(
            num_scalar_prefetch=0,
            grid=(num_blocks,),
            in_specs=[
                pl.BlockSpec((tb, H, W), lambda i: (i, 0, 0)),
                pl.BlockSpec((tb, H, W), lambda i: (i, 0, 0)),
            ],
            out_specs=pl.BlockSpec((1, 1, 128), lambda i: (i, 0, 0)),
        ),
        compiler_params=pltpu.CompilerParams(
            dimension_semantics=("parallel",),
            vmem_limit_bytes=vmem_limit,
        ),
    )(pred, gt)

    sum_dx = jnp.sum(partials[:, 0, 0])
    sum_dy = jnp.sum(partials[:, 0, 1])

    n_dx = B * H * (W - 1)            # number of x-gradient elements
    n_dy = B * (H - 1) * W            # number of y-gradient elements
    loss = sum_dx / jnp.float32(n_dx) + sum_dy / jnp.float32(n_dy)
    return jnp.float32(loss_weight) * loss


def _reference_loss(pred_depth, gt_depth, *, valid_mask=True, loss_weight=1.0):
    """Pure-JAX reference mirroring the PyTorch module."""
    err = gt_depth - pred_depth
    dx = err[:, :, :, 1:] - err[:, :, :, :-1]
    dy = err[:, :, 1:, :] - err[:, :, :-1, :]
    if valid_mask:
        dx = jnp.where(jnp.isnan(dx) | jnp.isinf(dx), 0.0, dx)
        dy = jnp.where(jnp.isnan(dy) | jnp.isinf(dy), 0.0, dy)
    return loss_weight * (jnp.mean(jnp.abs(dx)) + jnp.mean(jnp.abs(dy)))


if __name__ == "__main__":
    key = jax.random.PRNGKey(0)
    k1, k2, k3, k4 = jax.random.split(key, 4)

    # Case 1: module-scale shapes (N=2, C=4, H=W=16), valid_mask=True, with a
    # zeroed-gt pattern and an injected inf so the NaN/Inf zeroing path is
    # actually exercised.  (W=16 underfills the 128-lane vregs; production
    # depth maps with W >= 128 get full lane utilization.)
    N, C, H, W = 2, 4, 16, 16
    pred_depth = jax.random.uniform(k1, (N, C, H, W), jnp.float32) * 10.0
    gt_depth = jax.random.uniform(k2, (N, C, H, W), jnp.float32) * 10.0
    gt_depth = gt_depth.at[:, :, ::5, ::7].set(0.0)
    pred_depth = pred_depth.at[0, 1, 5, 7].set(jnp.inf)

    loss = jax.block_until_ready(
        grad_depth_error_loss(pred_depth, gt_depth,
                              valid_mask=True, loss_weight=1.0))
    ref = jax.block_until_ready(
        _reference_loss(pred_depth, gt_depth, valid_mask=True, loss_weight=1.0))
    assert abs(float(loss) - float(ref)) <= 2e-5 * max(1.0, abs(float(ref))), (loss, ref)

    # Case 2: B=3 with a tiny block budget to force a multi-block grid (TB
    # picked from divisors of B, so no padding and no ragged block);
    # valid_mask=False path.
    N2, C2 = 1, 3
    pred2 = jax.random.uniform(k3, (N2, C2, H, W), jnp.float32) * 5.0
    gt2 = jax.random.uniform(k4, (N2, C2, H, W), jnp.float32) * 5.0
    loss2 = jax.block_until_ready(
        grad_depth_error_loss(pred2, gt2, valid_mask=False, loss_weight=0.5,
                              target_block_bytes=2048))
    ref2 = jax.block_until_ready(
        _reference_loss(pred2, gt2, valid_mask=False, loss_weight=0.5))
    assert abs(float(loss2) - float(ref2)) <= 2e-5 * max(1.0, abs(float(ref2))), (loss2, ref2)

    print("KERNEL_OK")
</pallas_src>

<mosaic_0001>
module attributes {stable_mosaic.version = 11 : i64} {
  func.func @_grad_err_partial_kernel(%arg0: i32, %arg1: memref<4x16x16xf32, #tpu.memory_space<vmem>>, %arg2: memref<4x16x16xf32, #tpu.memory_space<vmem>>, %arg3: memref<1x1x128xf32, #tpu.memory_space<vmem>>) attributes {dimension_semantics = [#tpu.dimension_semantics<parallel>], iteration_bounds = array<i64: 2>, scalar_prefetch = 0 : i64, scratch_operands = 0 : i64, tpu.core_type = #tpu.core_type<tc>, window_params = [{transform_indices = @transform_0, window_bounds = array<i64: 4, 16, 16>}, {transform_indices = @transform_1, window_bounds = array<i64: 4, 16, 16>}, {transform_indices = @transform_2, window_bounds = array<i64: 1, 1, 128>}]} {
    %c0 = arith.constant 0 : index
    %c0_0 = arith.constant 0 : index
    %c0_1 = arith.constant 0 : index
    %0 = vector.load %arg2[%c0, %c0_0, %c0_1] : memref<4x16x16xf32, #tpu.memory_space<vmem>>, vector<4x16x16xf32>
    %c0_2 = arith.constant 0 : index
    %c0_3 = arith.constant 0 : index
    %c0_4 = arith.constant 0 : index
    %1 = vector.load %arg1[%c0_2, %c0_3, %c0_4] : memref<4x16x16xf32, #tpu.memory_space<vmem>>, vector<4x16x16xf32>
    %2 = arith.subf %0, %1 : vector<4x16x16xf32>
    %3 = vector.extract_strided_slice %2 {offsets = [0, 0, 1], sizes = [4, 16, 15], strides = [1, 1, 1]} : vector<4x16x16xf32> to vector<4x16x15xf32>
    %4 = vector.extract_strided_slice %2 {offsets = [0, 0, 0], sizes = [4, 16, 15], strides = [1, 1, 1]} : vector<4x16x16xf32> to vector<4x16x15xf32>
    %5 = arith.subf %3, %4 : vector<4x16x15xf32>
    %6 = math.absf %5 : vector<4x16x15xf32>
    %cst = arith.constant 0x7F800000 : f32
    %7 = vector.broadcast %cst : f32 to vector<4x16x15xf32>
    %8 = arith.cmpf olt, %6, %7 : vector<4x16x15xf32>
    %cst_5 = arith.constant 0.000000e+00 : f32
    %9 = vector.broadcast %cst_5 : f32 to vector<4x16x15xf32>
    %10 = arith.select %8, %6, %9 : vector<4x16x15xi1>, vector<4x16x15xf32>
    %11 = vector.shape_cast %10 : vector<4x16x15xf32> to vector<1x4x16x15xf32>
    %cst_6 = arith.constant dense<0.000000e+00> : vector<1xf32>
    %12 = vector.multi_reduction <add>, %11, %cst_6 [1, 2, 3] : vector<1x4x16x15xf32> to vector<1xf32>
    %13 = vector.shape_cast %12 : vector<1xf32> to vector<1x1x1x1xf32>
    %14 = vector.extract %13[0, 0, 0, 0] : f32 from vector<1x1x1x1xf32>
    %15 = vector.extract_strided_slice %2 {offsets = [0, 1, 0], sizes = [4, 15, 16], strides = [1, 1, 1]} : vector<4x16x16xf32> to vector<4x15x16xf32>
    %16 = vector.extract_strided_slice %2 {offsets = [0, 0, 0], sizes = [4, 15, 16], strides = [1, 1, 1]} : vector<4x16x16xf32> to vector<4x15x16xf32>
    %17 = arith.subf %15, %16 : vector<4x15x16xf32>
    %18 = math.absf %17 : vector<4x15x16xf32>
    %cst_7 = arith.constant 0x7F800000 : f32
    %19 = vector.broadcast %cst_7 : f32 to vector<4x15x16xf32>
    %20 = arith.cmpf olt, %18, %19 : vector<4x15x16xf32>
    %cst_8 = arith.constant 0.000000e+00 : f32
    %21 = vector.broadcast %cst_8 : f32 to vector<4x15x16xf32>
    %22 = arith.select %20, %18, %21 : vector<4x15x16xi1>, vector<4x15x16xf32>
    %23 = vector.shape_cast %22 : vector<4x15x16xf32> to vector<1x4x15x16xf32>
    %cst_9 = arith.constant dense<0.000000e+00> : vector<1xf32>
    %24 = vector.multi_reduction <add>, %23, %cst_9 [1, 2, 3] : vector<1x4x15x16xf32> to vector<1xf32>
    %25 = vector.shape_cast %24 : vector<1xf32> to vector<1x1x1x1xf32>
    %26 = vector.extract %25[0, 0, 0, 0] : f32 from vector<1x1x1x1xf32>
    %27 = tpu.iota {dimensions = array<i32: 1>} : vector<1x128xi32>
    %c0_i32 = arith.constant 0 : i32
    %28 = vector.broadcast %c0_i32 : i32 to vector<1x128xi32>
    %29 = arith.cmpi eq, %27, %28 : vector<1x128xi32>
    %c1_i32 = arith.constant 1 : i32
    %30 = vector.broadcast %c1_i32 : i32 to vector<1x128xi32>
    %31 = arith.cmpi eq, %27, %30 : vector<1x128xi32>
    %cst_10 = arith.constant 0.000000e+00 : f32
    %32 = vector.broadcast %26 : f32 to vector<1x128xf32>
    %33 = vector.broadcast %cst_10 : f32 to vector<1x128xf32>
    %34 = arith.select %31, %32, %33 : vector<1x128xi1>, vector<1x128xf32>
    %35 = vector.broadcast %14 : f32 to vector<1x128xf32>
    %36 = arith.select %29, %35, %34 : vector<1x128xi1>, vector<1x128xf32>
    %c0_11 = arith.constant 0 : index
    %c0_12 = arith.constant 0 : index
    %c0_13 = arith.constant 0 : index
    %37 = vector.load %arg3[%c0_11, %c0_12, %c0_13] : memref<1x1x128xf32, #tpu.memory_space<vmem>>, vector<1x1x128xf32>
    %38 = vector.shape_cast %37 : vector<1x1x128xf32> to vector<1x128xf32>
    %39 = vector.shape_cast %36 : vector<1x128xf32> to vector<1x1x128xf32>
    tpu.vector_store %arg3[%c0_11, %c0_12, %c0_13], %39 {strides = array<i32>} : memref<1x1x128xf32, #tpu.memory_space<vmem>>, vector<1x1x128xf32>,
    return
  }
  func.func @transform_0(%arg0: i32) -> (i32, i32, i32) {
    %c0_i32 = arith.constant 0 : i32
    %c0_i32_0 = arith.constant 0 : i32
    %c0_i32_1 = arith.constant 0 : i32
    return %arg0, %c0_i32, %c0_i32_0 : i32, i32, i32
  }
  func.func @transform_1(%arg0: i32) -> (i32, i32, i32) {
    %c0_i32 = arith.constant 0 : i32
    %c0_i32_0 = arith.constant 0 : i32
    %c0_i32_1 = arith.constant 0 : i32
    return %arg0, %c0_i32, %c0_i32_0 : i32, i32, i32
  }
  func.func @transform_2(%arg0: i32) -> (i32, i32, i32) {
    %c0_i32 = arith.constant 0 : i32
    %c0_i32_0 = arith.constant 0 : i32
    %c0_i32_1 = arith.constant 0 : i32
    return %arg0, %c0_i32, %c0_i32_0 : i32, i32, i32
  }
}

</mosaic_0001>

<bundles_post_ra>
// kernel: tpu_custom_call.1
= control target key start
LH: loop header
LB: loop body
LE: loop exit
PB: predicated region body
PF: predicated region fallthrough
CT: control target
= control target key end

     0   :  { %7 = vsyncpa [#allocation3], 0  ;;  %s1097_s0 = inlined_call_operand.hbm [shape: f32[8,16,16], index: 0, kind: input, shape index: {}]   ;;  %s1098_s1 = inlined_call_operand.hbm [shape: f32[8,16,16], index: 1, kind: input, shape index: {}]   ;;  %s1099_s2 = inlined_call_operand.hbm [shape: f32[2,1,128], index: 2, kind: output, shape index: {}]  }
   0x1   :  { %9 = vsyncpa [#allocation3 + $0x1], 0 }
   0x2   :  { %10 = vsyncpa [#allocation6], 0 }
   0x3   :  { %12 = vsyncpa [#allocation6 + $0x1], 0 }
   0x4   :  { %13 = vsyncpa [#allocation4], 0 }
   0x5   :  { %15 = vsyncpa [#allocation4 + $0x1], 0  ;;  %s803_s9 = smov 0   ;;  %s805_s10 = smov 0  }
   0x6   :  { %s807_s11 = smov 0   ;;  %s809_s12 = smov 0  }
   0x7 LB: > { %s824_s13 = sadd.s32 4294967295, %s779_s12   ;;  %s569_s14 = sadd.s32 4294967294, %s779_s12   ;;  %s779_s12 = sphi %s809_s12, %s1115_s12   ;;  %s775_s11 = sphi %s807_s11, %s1114_s11   ;;  %s771_s10 = sphi %s805_s10, %s1113_s10   ;;  %s767_s9 = sphi %s803_s9, %s1112_s9  }
   0x8   : > { %s828_s15 = sadd.s32 1, %s779_s12   ;;  %s28_s16 = sadd.s32 1, %s775_s11 }
   0x9   : > { %s25_s17 = ssub.s32 %s779_s12, %s828_s15  ;;  %p35_p0 = scmp.ne.s32.totalorder %s775_s11, %s771_s10 }
   0xa   : > { %p26_p1 = scmp.eq.s32.totalorder %s25_s17, 0  ;;  %p36_p2 = scmp.eq.s32.totalorder %s779_s12, 0 }
   0xb   : > { %p41_p3 = scmp.ne.s32.totalorder %s771_s10, %s767_s9  ;;  %p42_p4 = scmp.eq.s32.totalorder %s824_s13, 0 }
   0xc   : > { %s840_s18 = scalar_select %p26_p1, %s775_s11, %s28_s16  }
   0xd   : > { %p842_p5 = por %p36_p2, %p35_p0  ;;  %p846_p6 = por %p42_p4, %p41_p3 }
   0xe   : > { %p91_p7 = scmp.eq.s32.totalorder %s824_s13, 1  ;;  %p97_p8 = scmp.eq.s32.totalorder %s569_s14, 1 }
   0xf   : > { %s1103_s20 = scalar_select %p846_p6, 1, 0 }
  0x10   : > { %p611_p10 = scmp.lt.s32.totalorder %s779_s12, 2  ;;  %p853_p11 = por %p91_p7, %p35_p0 }
  0x11   : > { %p857_p12 = por %p97_p8, %p41_p3  ;;  %s862_s23 = sand.u32 1, %s775_s11  }
  0x12   : > { %s1104_s21 = scalar_select %p853_p11, 1, 0 }
  0x13   : > { %s1105_s22 = scalar_select %p857_p12, 1, 0 }
  0x14   : > { %s587_s24 = sshll.u32 %s779_s12, 10  ;;  %s572_s25 = sshll.u32 %s862_s23, 6 }
  0x15   : > { %s871_s28 = scalar_lea.hbm %s1097_s0, %s587_s24  ;;  %s121_s29 = scalar_lea.vmem [#allocation2], %s572_s25 }
  0x16   : > { %s129_s30 = sshll.u32 %s121_s29, 4  ;;  %p877_p13 = pnand %p611_p10, %p842_p5  ;;  %s881_s30 = int_to_ptr.vmem [resolvable:$true] %s129_s30 }
  0x17   : > { %s118_s4 = scalar_lea.sflag [#allocation3], %s862_s23  ;;  %s649_s5 = scalar_lea.hbm %s871_s28, 1024 }
  0x18   : > { %p650_p0 = scmp.ne.s32.totalorder %s871_s28, %s649_s5  ;;  %p651_p1 = pneg %p877_p13 }
  0x19   : > { %s654_s8 = scalar_lea.hbm %s1097_s0, 2048  ;;  %p655_p4 = scmp.lt.u32.totalorder %s871_s28, %s1097_s0 }
  0x1a   : > { %p652_p2 = pnand %p651_p1, %p650_p0  ;;  %p656_p5 = scmp.lt.u32.totalorder %s654_s8, %s649_s5 }
  0x1b   : > { %p658_p8 = scmp.lt.u32.totalorder %s649_s5, %s871_s28 }
  0x1c   : > { %p653_p3 = pneg %p652_p2  ;;  %p657_p7 = por %p656_p5, %p655_p4 }
  0x1e   : > { %p659_p10 = por %p658_p8, %p657_p7 }
  0x20   : > { %p660_p9 = pnand %p659_p10, %p653_p3 }
  0x22   : > { %663 = shalt.err (!%p660_p9)
}
  0x23   : > { %s664_s17 = scalar_lea.vmem %s881_s30, 1024  ;;  %s781_s19 = smov [#allocation2]  }
  0x24   : > { %p665_p0 = scmp.ne.s32.totalorder %s881_s30, %s664_s17  ;;  %s669_s26 = sshll.u32 %s781_s19, 4  ;;  %s670_s26 = int_to_ptr.vmem [resolvable:$false] %s669_s26 }
  0x25   : > { %s671_s27 = scalar_lea.vmem %s670_s26, 2048  ;;  %p672_p11 = scmp.lt.s32.totalorder %s881_s30, %s670_s26 }
  0x26   : > { %p667_p2 = pnand %p665_p0, %p651_p1  ;;  %p673_p4 = scmp.lt.s32.totalorder %s671_s27, %s664_s17 }
  0x28   : > { %p668_p12 = pneg %p667_p2  ;;  %p674_p5 = por %p673_p4, %p672_p11 }
  0x2a   : > { %p675_p7 = pnand %p674_p5, %p668_p12 }
  0x2c   : > { %678 = shalt.err (!%p675_p7)
}
  0x2d   : > { %s782_s29 = smov 128   ;;  %s783_s5 = smov 8  }
  0x2e   : > { %603 = dma.hbm_to_vmem [thread:$0]  (!%p877_p13), %s871_s28, 1024, %s881_s30, %s118_s4, %s782_s29, %s782_s29, %s783_s5  }
  0x2f   : > { %p580_p9 = scmp.ge.s32.totalorder %s779_s12, 1  ;;  %p159_p11 = scmp.lt.s32.totalorder %s779_s12, 3 }
  0x30   : > { %s925_s14 = scalar_lea.hbm %s1098_s1, %s587_s24  ;;  %s143_s16 = scalar_lea.vmem [#allocation5], %s572_s25 }
  0x31   : > { %p916_p12 = pnand %p580_p9, %p159_p11  ;;  %s151_s17 = sshll.u32 %s143_s16, 4  ;;  %s929_s17 = int_to_ptr.vmem [resolvable:$true] %s151_s17 }
  0x32   : > { %s140_s28 = scalar_lea.sflag [#allocation6], %s862_s23  ;;  %s679_s30 = scalar_lea.hbm %s925_s14, 1024 }
  0x33   : > { %p680_p3 = scmp.ne.s32.totalorder %s925_s14, %s679_s30  ;;  %s684_s24 = scalar_lea.hbm %s1098_s1, 2048 }
  0x34   : > { %p685_p0 = scmp.lt.u32.totalorder %s925_s14, %s1098_s1  ;;  %p686_p2 = scmp.lt.u32.totalorder %s684_s24, %s679_s30 }
  0x35   : > { %p682_p8 = pnand %p680_p3, %p651_p1  ;;  %p688_p5 = scmp.lt.u32.totalorder %s679_s30, %s925_s14 }
  0x36   : > { %p687_p4 = por %p686_p2, %p685_p0 }
  0x37   : > { %p683_p10 = pneg %p682_p8 }
  0x38   : > { %p689_p7 = por %p688_p5, %p687_p4 }
  0x3a   : > { %p690_p9 = pnand %p689_p7, %p683_p10 }
  0x3c   : > { %693 = shalt.err (!%p690_p9)
}
  0x3d   : > { %s694_s25 = scalar_lea.vmem %s929_s17, 1024  ;;  %s784_s7 = smov [#allocation5]  }
  0x3e   : > { %p695_p11 = scmp.ne.s32.totalorder %s929_s17, %s694_s25  ;;  %s699_s8 = sshll.u32 %s784_s7, 4  ;;  %s700_s8 = int_to_ptr.vmem [resolvable:$false] %s699_s8 }
  0x3f   : > { %s701_s16 = scalar_lea.vmem %s700_s8, 2048  ;;  %p702_p6 = scmp.lt.s32.totalorder %s929_s17, %s700_s8 }
  0x40   : > { %p697_p3 = pnand %p695_p11, %p651_p1  ;;  %p703_p0 = scmp.lt.s32.totalorder %s701_s16, %s694_s25 }
  0x42   : > { %p698_p8 = pneg %p697_p3  ;;  %p704_p2 = por %p703_p0, %p702_p6 }
  0x44   : > { %p705_p4 = pnand %p704_p2, %p698_p8 }
  0x46   : > { %708 = shalt.err (!%p705_p4)
}
  0x47   : > { %606 = dma.hbm_to_vmem [thread:$0]  (!%p877_p13), %s925_s14, 1024, %s929_s17, %s140_s28, %s782_s29, %s782_s29, %s783_s5  }
  0x48   : > { %163 = sbr.rel (%p916_p12) target bundleno = 563 (0x233), region = 28  ;;  %s963_s30 = sand.u32 (!%p916_p12), 1, %s771_s10  }
  0x49   : > { %s581_s4 = sshll.u32 (!%p916_p12), %s963_s30, 6  ;;  %s166_s19 = scalar_lea.sflag (!%p916_p12), [#allocation3], %s963_s30 }
  0x4a   : > { %s967_s3 = scalar_lea.vmem (!%p916_p12), [#allocation2], %s581_s4  ;;  %p1108_p6 = scmp.ne.s32.totalorder (!%p916_p12), %s1103_s20, 0 }
  0x4f   : > { %754 = dma.done.wait (%p1108_p6), %s166_s19, 1024  }
  0x50   : > { %756 = vsyncadd (%p1108_p6), %s166_s19, 4294966272  ;;  %s175_s23 = scalar_lea.sflag [#allocation6], %s963_s30  ;;  %s178_s29 = scalar_lea.vmem [#allocation5], %s581_s4 }
  0x51   : > { %758 = dma.done.wait (%p1108_p6), %s175_s23, 1024  }
  0x52   : > { %760 = vsyncadd (%p1108_p6), %s175_s23, 4294966272  ;;  %v205_v0 = vld [vmem:[%s178_s29] sm:$0xff]  ;;  %v207_v2 = vld [vmem:[%s178_s29 + $0x10] sm:$0xff]  ;;  %s785_s5 = smov 1   ;;  %vm350_vm0 = vcmask 1040384   ;;  %s786_s20 = smov 127  }
  0x53   : > { %v213_v1 = vld [vmem:[%s967_s3] sm:$0xff]  ;;  %v215_v4 = vld [vmem:[%s967_s3 + $0x10] sm:$0xff]  ;;  %v206_v5 = vld [vmem:[%s178_s29 + $0x8] sm:$0xff]  ;;  %vm411_vm13 = vcmask 1046528   ;;  %vm432_vm14 = vcmask 130048   ;;  %vm434_vm15 = vcmask 129024  }
  0x54   : > { %v221_v3 = vsub.f32 %v205_v0, %v213_v1  ;;  %v214_v6 = vld [vmem:[%s967_s3 + $0x8] sm:$0xff]  ;;  %v223_v7 = vsub.f32 %v207_v2, %v215_v4  ;;  %v208_v8 = vld [vmem:[%s178_s29 + $0x18] sm:$0xff]  ;;  %v209_v12 = vld [vmem:[%s178_s29 + $0x20] sm:$0xff]  ;;  %s583_s6 = sshll.u32 %s824_s13, 4  ;;  %s202_s17 = scalar_lea.vmem [#allocation7], %s963_s30 }
  0x55   : > { %v216_v9 = vld [vmem:[%s967_s3 + $0x18] sm:$0xff]  ;;  %v222_v10 = vsub.f32 %v206_v5, %v214_v6  ;;  %v217_v13 = vld [vmem:[%s967_s3 + $0x20] sm:$0xff]  ;;  %v210_v14 = vld [vmem:[%s178_s29 + $0x28] sm:$0xff]  ;;  %s480_s28 = sshll.u32 %s202_s17, 4  ;;  %s1053_s25 = scalar_lea.hbm %s1099_s2, %s583_s6  ;;  %s1055_s28 = int_to_ptr.vmem [resolvable:$true] %s480_s28 }
  0x56   : > { %237 = vrot.lane.b32.xlu0 %v221_v3, %s785_s5  ;;  %241 = vrot.lane.b32.xlu1 %v223_v7, %s785_s5  ;;  %v982_v11 = vsub.f32 %v208_v8, %v216_v9  ;;  %v218_v15 = vld [vmem:[%s967_s3 + $0x28] sm:$0xff]  ;;  %v986_v16 = vsub.f32 %v209_v12, %v217_v13  ;;  %v211_v18 = vld [vmem:[%s178_s29 + $0x30] sm:$0xff]  ;;  %v351_v24 = vrot.slane %v221_v3, 7  ;;  %v354_v32 = vrot.slane %v223_v7, 7  ;;  %s468_s13 = scalar_lea.sflag [#allocation4], %s963_s30  ;;  %s709_s7 = scalar_lea.vmem %s1055_s28, 16 }
  0x57   : > { %v989_v17 = vsub.f32 %v210_v14, %v218_v15  ;;  %v219_v19 = vld [vmem:[%s967_s3 + $0x30] sm:$0xff]  ;;  %v212_v20 = vld [vmem:[%s178_s29 + $0x38] sm:$0xff]  ;;  %v352_v25 = vrot.slane %v222_v10, 7  ;;  %p710_p13 = scmp.ne.s32.totalorder %s1055_s28, %s709_s7  ;;  %p1109_p1 = scmp.ne.s32.totalorder %s1104_s21, 0 }
  0x58   : > { %v220_v21 = vld [vmem:[%s967_s3 + $0x38] sm:$0xff]  ;;  %v994_v22 = vsub.f32 %v211_v18, %v219_v19  ;;  %v355_v33 = vrot.slane %v982_v11, 7  ;;  %v371_v36 = vsub.f32 %v221_v3, %v351_v24  ;;  %v373_v53 = vsub.f32 %v223_v7, %v354_v32  ;;  %s787_s8 = smov [#allocation7]  }
  0x59   : > { %v997_v23 = vsub.f32 %v212_v20, %v220_v21  ;;  %v353_v31 = vsel %vm350_vm0, %v351_v24, %v352_v25  ;;  %v357_v56 = vrot.slane %v986_v16, 7  ;;  %v358_v57 = vrot.slane %v989_v17, 7  ;;  %p711_p12 = pnand %p710_p13, %p1109_p1  ;;  %s713_s16 = sshll.u32 %s787_s8, 4  ;;  %s714_s16 = int_to_ptr.vmem [resolvable:$false] %s713_s16 }
  0x5a   : > { %239 = vrot.lane.b32.xlu0 %v222_v10, %s785_s5  ;;  %243 = vrot.lane.b32.xlu1 %v982_v11, %s785_s5  ;;  %v372_v41 = vsub.f32 %v222_v10, %v353_v31  ;;  %v356_v46 = vsel %vm350_vm0, %v354_v32, %v355_v33  ;;  %v379_v47 = vand.u32 2147483647, %v371_v36  ;;  %v381_v1 = vand.u32 2147483647, %v373_v53  ;;  %s715_s4 = scalar_lea.vmem %s714_s16, 32  ;;  %p716_p5 = scmp.lt.s32.totalorder %s1055_s28, %s714_s16 }
  0x5b   : > { %v374_v55 = vsub.f32 %v982_v11, %v356_v46  ;;  %v375_v9 = vsub.f32 %v986_v16, %v357_v56  ;;  %v360_v14 = vrot.slane %v994_v22, 7  ;;  %v361_v15 = vrot.slane %v997_v23, 7  ;;  %p712_p10 = pneg %p711_p12  ;;  %p717_p7 = scmp.lt.s32.totalorder %s715_s4, %s709_s7 }
  0x5c   : > { %v380_v52 = vand.u32 2147483647, %v372_v41  ;;  %vm387_vm5 = vcmp.lt.f32.partialorder %v379_v47, inf  ;;  %vm389_vm11 = vcmp.lt.f32.partialorder %v381_v1, inf }
  0x5d   : > { %v395_v4 = vsel %vm387_vm5, %v379_v47, 0.0  ;;  %v397_v19 = vsel %vm389_vm11, %v381_v1, 0.0  ;;  %v383_v20 = vand.u32 2147483647, %v375_v9  ;;  %v362_v24 = vsel %vm350_vm0, %v360_v14, %v361_v15  ;;  %p718_p9 = por %p717_p7, %p716_p5 }
  0x5e   : > { %245 = vrot.lane.b32.xlu0 %v986_v16, %s785_s5  ;;  %247 = vrot.lane.b32.xlu1 %v989_v17, %s785_s5  ;;  %vm388_vm8 = vcmp.lt.f32.partialorder %v380_v52, inf  ;;  %v412_v12 = vrot.slane %v395_v4, 1 }
  0x5f   : > { %v396_v8 = vsel %vm388_vm8, %v380_v52, 0.0  ;;  %p719_p11 = pnand %p718_p9, %p712_p10 }
  0x60   : > { %v413_v18 = vrot.slane %v396_v8, 1 }
  0x62   : > { %249 = vrot.lane.b32.xlu0 %v994_v22, %s785_s5  ;;  %251 = vrot.lane.b32.xlu1 %v997_v23, %s785_s5  ;;  %v414_v25 = vsel %vm411_vm13, %v412_v12, %v413_v18 }
  0xc8   : > { %v238_v26 = vpop.permute.xlu0 %237  ;;  %v242_v28 = vpop.permute.xlu1 %241 }
  0xc9   : > { %v261_v27 = vsub.f32 %v221_v3, %v238_v26  ;;  %v263_v29 = vsub.f32 %v223_v7, %v242_v28  ;;  %v382_v3 = vand.u32 2147483647, %v374_v55  ;;  %v359_v7 = vsel %vm350_vm0, %v357_v56, %v358_v57 }
  0xca   : > { %v378_v28 = vsub.f32 %v997_v23, %v362_v24 }
  0xcb   : > { %v269_v30 = vand.u32 2147483647, %v261_v27  ;;  %v271_v34 = vand.u32 2147483647, %v263_v29  ;;  %vm390_vm12 = vcmp.lt.f32.partialorder %v382_v3, inf  ;;  %v377_v27 = vsub.f32 %v994_v22, %v360_v14 }
  0xcc   : > { %v240_v35 = vpop.permute.xlu0 %239  ;;  %v244_v38 = vpop.permute.xlu1 %243  ;;  %v433_v29 = vsel %vm432_vm14, %v414_v25, 0.0 }
  0xcd   : > { %v262_v37 = vsub.f32 %v222_v10, %v240_v35  ;;  %vm277_vm1 = vcmp.lt.f32.partialorder %v269_v30, inf  ;;  %v264_v39 = vsub.f32 %v982_v11, %v244_v38  ;;  %vm279_vm2 = vcmp.lt.f32.partialorder %v271_v34, inf }
  0xce   : > { %v285_v40 = vsel %vm277_vm1, %v269_v30, 0.0  ;;  %v287_v45 = vsel %vm279_vm2, %v271_v34, 0.0  ;;  %v376_v11 = vsub.f32 %v989_v17, %v359_v7  ;;  %vm391_vm1 = vcmp.lt.f32.partialorder %v383_v20, inf }
  0xcf   : > { %v270_v42 = vand.u32 2147483647, %v262_v37  ;;  %301 = vrot.lane.b32.xlu0 %v285_v40, %s786_s20  ;;  %v272_v43 = vand.u32 2147483647, %v264_v39  ;;  %v435_v30 = vsel %vm434_vm15, %v413_v18, 0.0  ;;  %v399_v32 = vsel %vm391_vm1, %v383_v20, 0.0 }
  0xd0   : > { %v246_v44 = vpop.permute.xlu0 %245  ;;  %v248_v49 = vpop.permute.xlu1 %247  ;;  %v384_v21 = vand.u32 2147483647, %v376_v11  ;;  %v385_v34 = vand.u32 2147483647, %v377_v27  ;;  %v386_v35 = vand.u32 2147483647, %v378_v28  ;;  %v436_v36 = vadd.f32 %v435_v30, %v433_v29 }
  0xd1   : > { %v265_v48 = vsub.f32 %v986_v16, %v246_v44  ;;  %vm278_vm3 = vcmp.lt.f32.partialorder %v270_v42, inf  ;;  %v266_v50 = vsub.f32 %v989_v17, %v248_v49  ;;  %vm280_vm4 = vcmp.lt.f32.partialorder %v272_v43, inf }
  0xd2   : > { %v286_v51 = vsel %vm278_vm3, %v270_v42, 0.0  ;;  %v288_v60 = vsel %vm280_vm4, %v272_v43, 0.0  ;;  %v398_v16 = vsel %vm390_vm12, %v382_v3, 0.0  ;;  %v415_v17 = vrot.slane %v397_v19, 1 }
  0xd3   : > { %v273_v54 = vand.u32 2147483647, %v265_v48  ;;  %305 = vrot.lane.b32.xlu0 %v287_v45, %s786_s20  ;;  %303 = vrot.lane.b32.xlu1 %v286_v51, %s786_s20  ;;  %v274_v58 = vand.u32 2147483647, %v266_v50  ;;  %v416_v26 = vrot.slane %v398_v16, 1  ;;  %vm392_vm2 = vcmp.lt.f32.partialorder %v384_v21, inf }
  0xd4   : > { %v250_v59 = vpop.permute.xlu0 %249  ;;  %v252_v62 = vpop.permute.xlu1 %251  ;;  %v400_v33 = vsel %vm392_vm2, %v384_v21, 0.0  ;;  %v418_v38 = vrot.slane %v399_v32, 1  ;;  %vm393_vm0 = vcmp.lt.f32.partialorder %v385_v34, inf  ;;  %vm394_vm3 = vcmp.lt.f32.partialorder %v386_v35, inf }
  0xd5   : > { %v267_v61 = vsub.f32 %v994_v22, %v250_v59  ;;  %vm281_vm6 = vcmp.lt.f32.partialorder %v273_v54, inf  ;;  %v268_v63 = vsub.f32 %v997_v23, %v252_v62  ;;  %vm282_vm7 = vcmp.lt.f32.partialorder %v274_v58, inf }
  0xd6   : > { %v289_v0 = vsel %vm281_vm6, %v273_v54, 0.0  ;;  %v290_v6 = vsel %vm282_vm7, %v274_v58, 0.0  ;;  %v417_v31 = vsel %vm411_vm13, %v415_v17, %v416_v26  ;;  %v419_v39 = vrot.slane %v400_v33, 1 }
  0xd7   : > { %v275_v2 = vand.u32 2147483647, %v267_v61  ;;  %307 = vrot.lane.b32.xlu1 %v288_v60, %s786_s20  ;;  %309 = vrot.lane.b32.xlu0 %v289_v0, %s786_s20  ;;  %v276_v5 = vand.u32 2147483647, %v268_v63  ;;  %v437_v37 = vsel %vm432_vm14, %v417_v31, 0.0  ;;  %v439_v23 = vsel %vm434_vm15, %v416_v26, 0.0 }
  0xd8   : > { %v438_v22 = vadd.f32 %v437_v37, %v436_v36  ;;  %v420_v40 = vsel %vm411_vm13, %v418_v38, %v419_v39  ;;  %v401_v41 = vsel %vm393_vm0, %v385_v34, 0.0  ;;  %v402_v42 = vsel %vm394_vm3, %v386_v35, 0.0 }
  0xd9   : > { %vm283_vm9 = vcmp.lt.f32.partialorder %v275_v2, inf  ;;  %vm284_vm10 = vcmp.lt.f32.partialorder %v276_v5, inf  ;;  %v441_v44 = vsel %vm432_vm14, %v420_v40, 0.0  ;;  %v421_v45 = vrot.slane %v401_v41, 1 }
  0xda   : > { %v291_v10 = vsel %vm283_vm9, %v275_v2, 0.0  ;;  %v292_v13 = vsel %vm284_vm10, %v276_v5, 0.0  ;;  %v440_v43 = vadd.f32 %v439_v23, %v438_v22  ;;  %v422_v46 = vrot.slane %v402_v42, 1 }
  0xdb   : > { %311 = vrot.lane.b32.xlu1 %v290_v6, %s786_s20  ;;  %313 = vrot.lane.b32.xlu0 %v291_v10, %s786_s20  ;;  %v443_v48 = vsel %vm434_vm15, %v419_v39, 0.0  ;;  %vm325_vm4 = vcmask 121856   ;;  %v458_v30 = vlaneseq }
  0xdc   : > { %v442_v47 = vadd.f32 %v441_v44, %v440_v43  ;;  %v423_v49 = vsel %vm411_vm13, %v421_v45, %v422_v46  ;;  %v447_v53 = vsel %vm434_vm15, %v422_v46, 0.0 }
  0xdd   : > { %v445_v51 = vsel %vm432_vm14, %v423_v49, 0.0  ;;  %v459_v31 = vand.u32 127, %v458_v30 }
  0xde   : > { %v444_v50 = vadd.f32 %v443_v48, %v442_v47 }
  0xdf   : > { %315 = vrot.lane.b32.xlu1 %v292_v13, %s786_s20  ;;  %vm461_vm5 = vcmp.eq.s32.totalorder %v459_v31, 1  ;;  %vm460_vm6 = vcmp.eq.s32.totalorder %v459_v31, 0 }
  0xe0   : > { %v446_v52 = vadd.f32 %v445_v51, %v444_v50 }
  0xe2   : > { %v448_v54 = vadd.f32 %v447_v53, %v446_v52 }
 0x103   : > { %449 = vadd.xlane.f32.xlu1 %v448_v54 }
 0x141   : > { %v302_v55 = vpop.permute.xlu0 %301 }
 0x142   : > { %v326_v58 = vsel %vm325_vm4, %v302_v55, 0.0 }
 0x145   : > { %v304_v56 = vpop.permute.xlu1 %303  ;;  %v306_v57 = vpop.permute.xlu0 %305 }
 0x146   : > { %v327_v59 = vsel %vm325_vm4, %v304_v56, 0.0  ;;  %v329_v61 = vsel %vm325_vm4, %v306_v57, 0.0 }
 0x147   : > { %v328_v60 = vadd.f32 %v327_v59, %v326_v58 }
 0x149   : > { %v330_v62 = vadd.f32 %v329_v61, %v328_v60  ;;  %v308_v63 = vpop.permute.xlu1 %307  ;;  %v310_v0 = vpop.permute.xlu0 %309 }
 0x14a   : > { %v331_v1 = vsel %vm325_vm4, %v308_v63, 0.0  ;;  %v333_v2 = vsel %vm325_vm4, %v310_v0, 0.0 }
 0x14b   : > { %v332_v3 = vadd.f32 %v331_v1, %v330_v62 }
 0x14d   : > { %v334_v4 = vadd.f32 %v333_v2, %v332_v3  ;;  %v312_v5 = vpop.permute.xlu1 %311  ;;  %v314_v6 = vpop.permute.xlu0 %313 }
 0x14e   : > { %v335_v7 = vsel %vm325_vm4, %v312_v5, 0.0  ;;  %v337_v8 = vsel %vm325_vm4, %v314_v6, 0.0 }
 0x14f   : > { %v336_v9 = vadd.f32 %v335_v7, %v334_v4 }
 0x151   : > { %v338_v10 = vadd.f32 %v337_v8, %v336_v9  ;;  %v316_v11 = vpop.permute.xlu1 %315 }
 0x152   : > { %v339_v12 = vsel %vm325_vm4, %v316_v11, 0.0 }
 0x153   : > { %v340_v13 = vadd.f32 %v339_v12, %v338_v10 }
 0x155   : > { %341 = vadd.xlane.f32.xlu0 %v340_v13 }
 0x190   : > { %v450_v14 = vpop.xlane.xlu1 %449 }
 0x191   : > { %v451_v15 = vrot.slane %v450_v14, 4 }
 0x193   : > { %v452_v18 = vadd.f32 %v451_v15, %v450_v14 }
 0x195   : > { %v453_v19 = vrot.slane %v452_v18, 2 }
 0x197   : > { %v454_v24 = vadd.f32 %v453_v19, %v452_v18 }
 0x199   : > { %v455_v26 = vrot.slane %v454_v24, 1 }
 0x19b   : > { %v456_v29 = vadd.f32 %v455_v26, %v454_v24 }
 0x1e2   : > { %v342_v16 = vpop.xlane.xlu0 %341 }
 0x1e3   : > { %v343_v20 = vrot.slane %v342_v16, 4 }
 0x1e5   : > { %v344_v21 = vadd.f32 %v343_v20, %v342_v16 }
 0x1e7   : > { %v345_v25 = vrot.slane %v344_v21, 2 }
 0x1e9   : > { %v346_v17 = vadd.f32 %v345_v25, %v344_v21 }
 0x1eb   : > { %v347_v27 = vrot.slane %v346_v17, 1 }
 0x1ed   : > { %v348_v28 = vadd.f32 %v347_v27, %v346_v17 }
 0x1ef   : > { %590 = vpush %v348_v28 }
 0x1f0   : > { %592 = vpush %v456_v29 }
 0x220   : > { %s591_s14 = spop %590 }
 0x221   : > { %v464_v32 = vstv %s591_s14  ;;  %s593_s24 = spop %592 }
 0x222   : > { %v462_v33 = vstv %s593_s24 }
 0x223   : > { %v463_v34 = vsel %vm461_vm5, %v462_v33, 0.0 }
 0x224   : > { %v465_v35 = vsel %vm460_vm6, %v464_v32, %v463_v34 }
 0x225   : > { %466 = vst [vmem:[%s202_s17] sm:$0x1] %v465_v35 }
 0x226   : > { %722 = shalt.err (!%p719_p11)
}
 0x227   : > { %s723_s30 = scalar_lea.hbm %s1053_s25, 16  ;;  %s727_s23 = scalar_lea.hbm %s1099_s2, 32 }
 0x228   : > { %p724_p3 = scmp.ne.s32.totalorder %s1053_s25, %s723_s30  ;;  %p728_p2 = scmp.lt.u32.totalorder %s1053_s25, %s1099_s2 }
 0x229   : > { %p729_p4 = scmp.lt.u32.totalorder %s727_s23, %s723_s30  ;;  %p731_p13 = scmp.lt.u32.totalorder %s723_s30, %s1053_s25 }
 0x22a   : > { %p725_p8 = pnand %p724_p3, %p1109_p1 }
 0x22b   : > { %p730_p6 = por %p729_p4, %p728_p2 }
 0x22c   : > { %p726_p0 = pneg %p725_p8 }
 0x22d   : > { %p732_p12 = por %p731_p13, %p730_p6 }
 0x22f   : > { %p733_p10 = pnand %p732_p12, %p726_p0 }
 0x231   : > { %736 = shalt.err (!%p733_p10)
}
 0x232   : > { %598 = dma.vmem_to_hbm [thread:$0]  (%p1109_p1), %s1055_s28, 16, %s1053_s25, %s468_s13  }
 0x233 PF: > { %s492_s20 = sand.u32 1, %s767_s9   ;;  %p1110_p5 = scmp.ne.s32.totalorder %s1105_s22, 0 }
 0x234   : > { %p1111_p7 = scmp.ge.s32.totalorder %s779_s12, 2  ;;  %s493_s6 = scalar_lea.sflag [#allocation4], %s492_s20 }
 0x236   : > { %p608_p9 = pnand %p1111_p7, %p1110_p5 }
 0x238   : > { %762 = dma.done.wait (!%p608_p9), %s493_s6, 16  }
 0x239   : > { %764 = vsyncadd (!%p608_p9), %s493_s6, 4294967280  ;;  %p18_p11 = scmp.ge.s32.totalorder %s828_s15, 4   ;;  %s1112_s9 = smov %s771_s10 }
 0x23a   : > { %s1113_s10 = smov %s775_s11  ;;  %s1114_s11 = smov %s840_s18 }
 0x23b   : > { %s1115_s12 = smov %s828_s15  ;;  %20 = sbr.rel (!%p18_p11) target bundleno = 7 (0x7), region = 86 }
 0x242   :  { %497 = vsyncpa [#allocation3], 1 }
 0x243   :  { %499 = vsyncpa [#allocation3 + $0x1], 1 }
 0x244   :  { %500 = vsyncpa [#allocation6], 1 }
 0x245   :  { %502 = vsyncpa [#allocation6 + $0x1], 1 }
 0x246   :  { %503 = vsyncpa [#allocation4], 1 }
 0x247   :  { %505 = vsyncpa [#allocation4 + $0x1], 1 }

</bundles_post_ra>
